<compile_context>
chip_gen: v6e
topology: v6e:2x2x1
jax: 0.10.0
libtpu: 0.0.40
codegen_flags: <defaults>
</compile_context>

<pallas_src>
import functools
import math

import jax
import jax.numpy as jnp
import numpy as np
from jax.experimental import pallas as pl
from jax.experimental.pallas import tpu as pltpu


# ------------------------------ packed-parameter layout ------------------------------
def _round8(x):
    return -(-x // 8) * 8


def _layout(z_dim, n_hidden, n_layers, n_out, d2, bs):
    """Static row offsets inside the two packed parameter operands."""
    assert d2 >= 1 and n_out % d2 == 0
    H = n_hidden
    vb = _round8(bs)                       # rows per pre-broadcast vector block
    off_whid = _round8(z_dim)              # hidden top-half weights start here
    off_vec = off_whid + n_layers * H      # per-layer vector blocks start here
    ph_rows = off_vec + (n_layers + 1) * 4 * vb
    off_bpost = _round8(H)                 # wpost occupies rows [0, H)
    pout_rows = off_bpost + vb
    return dict(vb=vb, off_wpre=0, off_whid=off_whid, off_vec=off_vec, ph_rows=ph_rows,
                off_wpost=0, off_bpost=off_bpost, pout_rows=pout_rows)


# --------------------------------- fused Generator kernel ----------------------------
def generator_kernel(z_ref, y_ref, gn_ref, ph_ref, pout_ref, out_ref, *,
                     n_layers, d2, lay):
    f32 = jnp.float32
    bs, z_dim = z_ref.shape
    H = ph_ref.shape[-1]
    n_out = out_ref.shape[-1]
    vb = lay["vb"]

    def brow(ref, row):
        # Parameter row pre-broadcast (host-side) across batch sublanes -> plain aligned
        # (bs, H) load; no sublane-broadcast relayout on the serial LayerNorm chain.
        return ref[row:row + bs, :]

    def layernorm(x, g, b):
        # one-pass LN: mean and E[x^2] are independent reductions; var = E[x^2] - mu^2
        mu = jnp.mean(x, axis=-1, keepdims=True)
        ms = jnp.mean(x * x, axis=-1, keepdims=True)
        return (x - mu) * jax.lax.rsqrt(ms - mu * mu + 1e-5) * g + b

    def layer_vectors(j):
        r = lay["off_vec"] + j * 4 * vb
        return (brow(ph_ref, r),             # effective bias (linear bias + folded embed bias)
                brow(ph_ref, r + vb),        # LayerNorm gain
                brow(ph_ref, r + 2 * vb),    # LayerNorm beta
                brow(ph_ref, r + 3 * vb))    # y coefficient  we @ W_bot  (rank-1 y-embed)

    z = z_ref[...]                                        # (bs, Z)
    y_b = jnp.broadcast_to(y_ref[...], (bs, H))           # broadcast y once, reuse per layer

    # pre: Linear(Z+H, H) on cat(z, y_embed) -> LayerNorm -> ReLU.  The y_embed half of
    # the matmul uses the rank-1 identity (y*we) @ W_bot == y * (we @ W_bot): a broadcast
    # multiply with a precomputed row instead of an MXU matmul.
    b0, g0, be0, c0 = layer_vectors(0)
    wpre = ph_ref[lay["off_wpre"]:lay["off_wpre"] + z_dim, :]
    h = jnp.dot(z, wpre, preferred_element_type=f32) + (y_b * c0 + b0)
    h = jnp.maximum(layernorm(h, g0, be0), 0.0)

    # hidden: n_layers x [Linear(2H, H) on cat(h, y_embed) -> LayerNorm -> LeakyReLU(0.2)]
    for j in range(n_layers):                             # static unroll
        bj, gj, bej, cj = layer_vectors(j + 1)
        off = lay["off_whid"] + j * H
        wj = ph_ref[off:off + H, :]
        hj = jnp.dot(h, wj, preferred_element_type=f32) + (y_b * cj + bj)
        hj = layernorm(hj, gj, bej)
        h = jnp.where(hj >= 0, hj, 0.2 * hj)

    # post: Linear(H, n_out) -> logits
    wpost = pout_ref[lay["off_wpost"]:lay["off_wpost"] + H, :]
    logits = jnp.dot(h, wpost, preferred_element_type=f32) + brow(pout_ref, lay["off_bpost"])

    # ---- hard Gumbel-Softmax over d1 groups of d2 contiguous lanes ----------------------
    # argmax((logits + g) / tau) == argmax(logits + g) for tau > 0, so tau cancels and the
    # soft-softmax path is unnecessary for the forward value.
    yv = logits + gn_ref[...]                             # (bs, n_out)
    lane = jax.lax.broadcasted_iota(jnp.int32, yv.shape, 1)
    neg = jnp.float32(-1e30)
    d1 = n_out // d2
    hard = jnp.zeros_like(yv)
    for g in range(d1):                                   # static unroll; groups independent,
        mask = (lane >= g * d2) & (lane < (g + 1) * d2)   # so the reduces pipeline on the XLUs
        gmax = jnp.max(jnp.where(mask, yv, neg), axis=-1, keepdims=True)
        # with continuous gumbel noise the group max is unique w.p. 1, so exact equality
        # selects exactly one lane -> no separate first-index min-reduce needed.
        hard = hard + jnp.where(mask & (yv == gmax), 1.0, 0.0)

    # TODO(synk): straight-through gradient (custom_vjp) not implemented; forward-only.
    out_ref[...] = hard


# -------------------------------------- wrapper ---------------------------------------
def generator_forward(p_h, p_out, z, y, gumbel_noise, *, n_layers, d2, lay, tau=1.0):
    assert tau > 0.0  # tau only rescales logits; the hard (one-hot) forward is invariant to it
    bs, z_dim = z.shape
    n_out = gumbel_noise.shape[-1]
    H = p_h.shape[-1]
    args = (z, y, gumbel_noise, p_h, p_out)
    vmem = pl.BlockSpec(memory_space=pltpu.MemorySpace.VMEM)
    cost = pl.CostEstimate(
        flops=2 * bs * (z_dim * H + n_layers * H * H + H * n_out),
        transcendentals=bs * (n_layers + 1),              # one rsqrt per LayerNorm row
        bytes_accessed=sum(int(a.size) * a.dtype.itemsize for a in args) + bs * n_out * 4,
    )
    # Single invocation, no grid: everything fits trivially in VMEM at bs=8 and a grid
    # would only add per-step overhead.  For large batches on v7x, add a 1-D grid over
    # batch rows with dimension_semantics=("parallel",) (2 TensorCores); on v6e/v7x also
    # cast the packed weights and h to bf16 for the jnp.dot calls.
    return pl.pallas_call(
        functools.partial(generator_kernel, n_layers=n_layers, d2=d2, lay=lay),
        out_shape=jax.ShapeDtypeStruct((bs, n_out), jnp.float32),
        in_specs=[vmem] * len(args),
        out_specs=vmem,
        cost_estimate=cost,
    )(*args)


# ------------------------------- init / packing / reference ---------------------------
def init_raw_params(key, z_dim, n_hidden, n_out, n_layers):
    """PyTorch-style nn.Linear init; weights stored (in, out) = nn.Linear.weight.T."""
    H = n_hidden
    ks = jax.random.split(key, n_layers + 3)

    def linear(k, fan_in, fan_out):
        kw, kb = jax.random.split(k)
        bound = 1.0 / math.sqrt(fan_in)
        w = jax.random.uniform(kw, (fan_in, fan_out), jnp.float32, -bound, bound)
        b = jax.random.uniform(kb, (1, fan_out), jnp.float32, -bound, bound)
        return w, b

    we, be = linear(ks[0], 1, H)
    wpre, bpre = linear(ks[1], z_dim + H, H)
    whid, bhid = [], []
    for j in range(n_layers):
        w, b = linear(ks[2 + j], 2 * H, H)
        whid.append(w)
        bhid.append(b)
    wpost, bpost = linear(ks[2 + n_layers], H, n_out)
    return dict(we=we, be=be, wpre=wpre, bpre=bpre, whid=whid, bhid=bhid,
                wpost=wpost, bpost=bpost,
                ln_g=jnp.ones((n_layers + 1, H), jnp.float32),
                ln_b=jnp.zeros((n_layers + 1, H), jnp.float32))


def pack_params(raw, z_dim, n_hidden, n_out, n_layers, d2, bs):
    """Pack all parameters into two lane-shared operands (rank-1 y-embed folded in)."""
    H = n_hidden
    lay = _layout(z_dim, H, n_layers, n_out, d2, bs)
    we, be = np.asarray(raw["we"]), np.asarray(raw["be"])
    wpre, bpre = np.asarray(raw["wpre"]), np.asarray(raw["bpre"])
    wpost, bpost = np.asarray(raw["wpost"]), np.asarray(raw["bpost"])
    ln_g, ln_b = np.asarray(raw["ln_g"]), np.asarray(raw["ln_b"])
    vb = lay["vb"]

    p_h = np.zeros((lay["ph_rows"], H), np.float32)
    p_h[:z_dim] = wpre[:z_dim]

    def put_layer(slot, w_bot, b):
        r = lay["off_vec"] + slot * 4 * vb
        p_h[r:r + vb] = (b + be @ w_bot)[0]      # effective bias (embed bias folded, exact)
        p_h[r + vb:r + 2 * vb] = ln_g[slot]      # LayerNorm gain
        p_h[r + 2 * vb:r + 3 * vb] = ln_b[slot]  # LayerNorm beta
        p_h[r + 3 * vb:r + 4 * vb] = (we @ w_bot)[0]   # y coefficient (rank-1 identity)

    put_layer(0, wpre[z_dim:], bpre)
    for j in range(n_layers):
        w, b = np.asarray(raw["whid"][j]), np.asarray(raw["bhid"][j])
        p_h[lay["off_whid"] + j * H: lay["off_whid"] + (j + 1) * H] = w[:H]
        put_layer(j + 1, w[H:], b)

    p_out = np.zeros((lay["pout_rows"], n_out), np.float32)
    p_out[:H] = wpost
    p_out[lay["off_bpost"]:lay["off_bpost"] + vb] = bpost[0]
    return jnp.asarray(p_h), jnp.asarray(p_out), lay


def generator_reference(raw, z, y, gn, *, n_layers, discrete_dims, tau):
    """Pure-JAX forward mirroring the PyTorch module (for the self-check)."""
    d1, d2 = discrete_dims

    def ln(x, g, b):
        mu = x.mean(-1, keepdims=True)
        var = ((x - mu) ** 2).mean(-1, keepdims=True)
        return (x - mu) / jnp.sqrt(var + 1e-5) * g + b

    y_embed = y @ raw["we"] + raw["be"]
    h = jnp.concatenate([z, y_embed], 1) @ raw["wpre"] + raw["bpre"]
    h = jnp.maximum(ln(h, raw["ln_g"][0], raw["ln_b"][0]), 0.0)
    for j in range(n_layers):
        hj = jnp.concatenate([h, y_embed], 1) @ raw["whid"][j] + raw["bhid"][j]
        hj = ln(hj, raw["ln_g"][j + 1], raw["ln_b"][j + 1])
        h = jnp.where(hj >= 0, hj, 0.2 * hj)
    logits = h @ raw["wpost"] + raw["bpost"]
    yv = ((logits + gn) / tau).reshape(-1, d1, d2)
    soft = jax.nn.softmax(yv, axis=-1)
    hard = jax.nn.one_hot(jnp.argmax(soft, -1), d2, dtype=yv.dtype)
    out = hard - jax.lax.stop_gradient(soft) + soft        # forward value == hard
    return out.reshape(z.shape[0], -1)


# --------------------------------------- demo -----------------------------------------
if __name__ == "__main__":
    bs, z_dim, n_hidden, n_layers = 8, 8, 32, 4
    discrete_dims = (8, 4)                 # D1 categorical variables with D2 categories each
    n_out = discrete_dims[0] * discrete_dims[1]
    tau = 1.0

    key = jax.random.PRNGKey(0)
    kp, kz, ky, kg = jax.random.split(key, 4)
    raw = init_raw_params(kp, z_dim, n_hidden, n_out, n_layers)
    p_h, p_out, lay = pack_params(raw, z_dim, n_hidden, n_out, n_layers,
                                  discrete_dims[1], bs)

    z = jax.random.normal(kz, (bs, z_dim), jnp.float32)
    y = jax.random.normal(ky, (bs, 1), jnp.float32)
    # Gumbel(0,1) noise sampled host-side (same distribution F.gumbel_softmax draws).
    gnoise = jax.random.gumbel(kg, (bs, n_out), jnp.float32)

    out = generator_forward(p_h, p_out, z, y, gnoise,
                            n_layers=n_layers, d2=discrete_dims[1], lay=lay, tau=tau)
    out = jax.block_until_ready(out)

    assert out.shape == (bs, n_out), out.shape
    out3 = out.reshape(bs, *discrete_dims)
    # each categorical group sums to 1 and contains exactly one hot entry
    assert jnp.allclose(out3.sum(-1), 1.0, atol=1e-4), out3.sum(-1)
    assert bool(jnp.all((out3 > 0.5).sum(-1) == 1)), (out3 > 0.5).sum(-1)
    # numerical self-check against a pure-JAX reference of the PyTorch forward
    ref = generator_reference(raw, z, y, gnoise, n_layers=n_layers,
                              discrete_dims=discrete_dims, tau=tau)
    assert jnp.allclose(out, ref, atol=1e-3), jnp.max(jnp.abs(out - ref))
    print("KERNEL_OK")
</pallas_src>

<mosaic_0001>
module attributes {stable_mosaic.version = 11 : i64} {
  func.func @generator_kernel(%arg0: memref<8x8xf32, #tpu.memory_space<vmem>>, %arg1: memref<8x1xf32, #tpu.memory_space<vmem>>, %arg2: memref<8x32xf32, #tpu.memory_space<vmem>>, %arg3: memref<296x32xf32, #tpu.memory_space<vmem>>, %arg4: memref<40x32xf32, #tpu.memory_space<vmem>>, %arg5: memref<8x32xf32, #tpu.memory_space<vmem>>) attributes {dimension_semantics = [], scalar_prefetch = 0 : i64, scratch_operands = 0 : i64, tpu.core_type = #tpu.core_type<tc>} {
    %c0 = arith.constant 0 : index
    %c0_0 = arith.constant 0 : index
    %0 = vector.load %arg0[%c0, %c0_0] : memref<8x8xf32, #tpu.memory_space<vmem>>, vector<8x8xf32>
    %c0_1 = arith.constant 0 : index
    %c0_2 = arith.constant 0 : index
    %1 = vector.load %arg1[%c0_1, %c0_2] : memref<8x1xf32, #tpu.memory_space<vmem>>, vector<8x1xf32>
    %2 = vector.shape_cast %1 : vector<8x1xf32> to vector<8x1xf32>
    %3 = vector.broadcast %2 : vector<8x1xf32> to vector<8x32xf32>
    %c136 = arith.constant 136 : index
    %c0_3 = arith.constant 0 : index
    %4 = vector.load %arg3[%c136, %c0_3] : memref<296x32xf32, #tpu.memory_space<vmem>>, vector<8x32xf32>
    %c144 = arith.constant 144 : index
    %c0_4 = arith.constant 0 : index
    %5 = vector.load %arg3[%c144, %c0_4] : memref<296x32xf32, #tpu.memory_space<vmem>>, vector<8x32xf32>
    %c152 = arith.constant 152 : index
    %c0_5 = arith.constant 0 : index
    %6 = vector.load %arg3[%c152, %c0_5] : memref<296x32xf32, #tpu.memory_space<vmem>>, vector<8x32xf32>
    %c160 = arith.constant 160 : index
    %c0_6 = arith.constant 0 : index
    %7 = vector.load %arg3[%c160, %c0_6] : memref<296x32xf32, #tpu.memory_space<vmem>>, vector<8x32xf32>
    %c0_7 = arith.constant 0 : index
    %c0_8 = arith.constant 0 : index
    %8 = vector.load %arg3[%c0_7, %c0_8] : memref<296x32xf32, #tpu.memory_space<vmem>>, vector<8x32xf32>
    %cst = arith.constant dense<0.000000e+00> : vector<8x32xf32>
    %9 = tpu.matmul %0, %8, %cst {dimension_numbers = #tpu.dot_dimension_numbers<[1], [0], [0], [1], [0, 0, 1, 1], [], []>} : vector<8x8xf32>, vector<8x32xf32>, vector<8x32xf32> -> vector<8x32xf32>
    %10 = arith.mulf %3, %7 : vector<8x32xf32>
    %11 = arith.addf %10, %4 : vector<8x32xf32>
    %12 = arith.addf %9, %11 : vector<8x32xf32>
    %cst_9 = arith.constant dense<0.000000e+00> : vector<8xf32>
    %13 = vector.multi_reduction <add>, %12, %cst_9 [1] : vector<8x32xf32> to vector<8xf32>
    %14 = vector.shape_cast %13 : vector<8xf32> to vector<8x1xf32>
    %cst_10 = arith.constant 3.200000e+01 : f32
    %15 = vector.broadcast %cst_10 : f32 to vector<8x1xf32>
    %16 = arith.divf %14, %15 : vector<8x1xf32>
    %17 = arith.mulf %12, %12 : vector<8x32xf32>
    %cst_11 = arith.constant dense<0.000000e+00> : vector<8xf32>
    %18 = vector.multi_reduction <add>, %17, %cst_11 [1] : vector<8x32xf32> to vector<8xf32>
    %19 = vector.shape_cast %18 : vector<8xf32> to vector<8x1xf32>
    %cst_12 = arith.constant 3.200000e+01 : f32
    %20 = vector.broadcast %cst_12 : f32 to vector<8x1xf32>
    %21 = arith.divf %19, %20 : vector<8x1xf32>
    %22 = vector.broadcast %16 : vector<8x1xf32> to vector<8x32xf32>
    %23 = arith.subf %12, %22 : vector<8x32xf32>
    %24 = arith.mulf %16, %16 : vector<8x1xf32>
    %25 = arith.subf %21, %24 : vector<8x1xf32>
    %cst_13 = arith.constant 9.99999974E-6 : f32
    %26 = vector.broadcast %cst_13 : f32 to vector<8x1xf32>
    %27 = arith.addf %25, %26 : vector<8x1xf32>
    %28 = math.rsqrt %27 : vector<8x1xf32>
    %29 = vector.broadcast %28 : vector<8x1xf32> to vector<8x32xf32>
    %30 = arith.mulf %23, %29 : vector<8x32xf32>
    %31 = arith.mulf %30, %5 : vector<8x32xf32>
    %32 = arith.addf %31, %6 : vector<8x32xf32>
    %cst_14 = arith.constant 0.000000e+00 : f32
    %33 = vector.broadcast %cst_14 : f32 to vector<8x32xf32>
    %34 = arith.maximumf %32, %33 : vector<8x32xf32>
    %c168 = arith.constant 168 : index
    %c0_15 = arith.constant 0 : index
    %35 = vector.load %arg3[%c168, %c0_15] : memref<296x32xf32, #tpu.memory_space<vmem>>, vector<8x32xf32>
    %c176 = arith.constant 176 : index
    %c0_16 = arith.constant 0 : index
    %36 = vector.load %arg3[%c176, %c0_16] : memref<296x32xf32, #tpu.memory_space<vmem>>, vector<8x32xf32>
    %c184 = arith.constant 184 : index
    %c0_17 = arith.constant 0 : index
    %37 = vector.load %arg3[%c184, %c0_17] : memref<296x32xf32, #tpu.memory_space<vmem>>, vector<8x32xf32>
    %c192 = arith.constant 192 : index
    %c0_18 = arith.constant 0 : index
    %38 = vector.load %arg3[%c192, %c0_18] : memref<296x32xf32, #tpu.memory_space<vmem>>, vector<8x32xf32>
    %c8 = arith.constant 8 : index
    %c0_19 = arith.constant 0 : index
    %39 = vector.load %arg3[%c8, %c0_19] : memref<296x32xf32, #tpu.memory_space<vmem>>, vector<32x32xf32>
    %cst_20 = arith.constant dense<0.000000e+00> : vector<8x32xf32>
    %40 = tpu.matmul %34, %39, %cst_20 {dimension_numbers = #tpu.dot_dimension_numbers<[1], [0], [0], [1], [0, 0, 1, 1], [], []>} : vector<8x32xf32>, vector<32x32xf32>, vector<8x32xf32> -> vector<8x32xf32>
    %41 = arith.mulf %3, %38 : vector<8x32xf32>
    %42 = arith.addf %41, %35 : vector<8x32xf32>
    %43 = arith.addf %40, %42 : vector<8x32xf32>
    %cst_21 = arith.constant dense<0.000000e+00> : vector<8xf32>
    %44 = vector.multi_reduction <add>, %43, %cst_21 [1] : vector<8x32xf32> to vector<8xf32>
    %45 = vector.shape_cast %44 : vector<8xf32> to vector<8x1xf32>
    %cst_22 = arith.constant 3.200000e+01 : f32
    %46 = vector.broadcast %cst_22 : f32 to vector<8x1xf32>
    %47 = arith.divf %45, %46 : vector<8x1xf32>
    %48 = arith.mulf %43, %43 : vector<8x32xf32>
    %cst_23 = arith.constant dense<0.000000e+00> : vector<8xf32>
    %49 = vector.multi_reduction <add>, %48, %cst_23 [1] : vector<8x32xf32> to vector<8xf32>
    %50 = vector.shape_cast %49 : vector<8xf32> to vector<8x1xf32>
    %cst_24 = arith.constant 3.200000e+01 : f32
    %51 = vector.broadcast %cst_24 : f32 to vector<8x1xf32>
    %52 = arith.divf %50, %51 : vector<8x1xf32>
    %53 = vector.broadcast %47 : vector<8x1xf32> to vector<8x32xf32>
    %54 = arith.subf %43, %53 : vector<8x32xf32>
    %55 = arith.mulf %47, %47 : vector<8x1xf32>
    %56 = arith.subf %52, %55 : vector<8x1xf32>
    %cst_25 = arith.constant 9.99999974E-6 : f32
    %57 = vector.broadcast %cst_25 : f32 to vector<8x1xf32>
    %58 = arith.addf %56, %57 : vector<8x1xf32>
    %59 = math.rsqrt %58 : vector<8x1xf32>
    %60 = vector.broadcast %59 : vector<8x1xf32> to vector<8x32xf32>
    %61 = arith.mulf %54, %60 : vector<8x32xf32>
    %62 = arith.mulf %61, %36 : vector<8x32xf32>
    %63 = arith.addf %62, %37 : vector<8x32xf32>
    %cst_26 = arith.constant 0.000000e+00 : f32
    %64 = vector.broadcast %cst_26 : f32 to vector<8x32xf32>
    %65 = arith.cmpf oge, %63, %64 : vector<8x32xf32>
    %cst_27 = arith.constant 2.000000e-01 : f32
    %66 = vector.broadcast %cst_27 : f32 to vector<8x32xf32>
    %67 = arith.mulf %66, %63 : vector<8x32xf32>
    %68 = arith.select %65, %63, %67 : vector<8x32xi1>, vector<8x32xf32>
    %c200 = arith.constant 200 : index
    %c0_28 = arith.constant 0 : index
    %69 = vector.load %arg3[%c200, %c0_28] : memref<296x32xf32, #tpu.memory_space<vmem>>, vector<8x32xf32>
    %c208 = arith.constant 208 : index
    %c0_29 = arith.constant 0 : index
    %70 = vector.load %arg3[%c208, %c0_29] : memref<296x32xf32, #tpu.memory_space<vmem>>, vector<8x32xf32>
    %c216 = arith.constant 216 : index
    %c0_30 = arith.constant 0 : index
    %71 = vector.load %arg3[%c216, %c0_30] : memref<296x32xf32, #tpu.memory_space<vmem>>, vector<8x32xf32>
    %c224 = arith.constant 224 : index
    %c0_31 = arith.constant 0 : index
    %72 = vector.load %arg3[%c224, %c0_31] : memref<296x32xf32, #tpu.memory_space<vmem>>, vector<8x32xf32>
    %c40 = arith.constant 40 : index
    %c0_32 = arith.constant 0 : index
    %73 = vector.load %arg3[%c40, %c0_32] : memref<296x32xf32, #tpu.memory_space<vmem>>, vector<32x32xf32>
    %cst_33 = arith.constant dense<0.000000e+00> : vector<8x32xf32>
    %74 = tpu.matmul %68, %73, %cst_33 {dimension_numbers = #tpu.dot_dimension_numbers<[1], [0], [0], [1], [0, 0, 1, 1], [], []>} : vector<8x32xf32>, vector<32x32xf32>, vector<8x32xf32> -> vector<8x32xf32>
    %75 = arith.mulf %3, %72 : vector<8x32xf32>
    %76 = arith.addf %75, %69 : vector<8x32xf32>
    %77 = arith.addf %74, %76 : vector<8x32xf32>
    %cst_34 = arith.constant dense<0.000000e+00> : vector<8xf32>
    %78 = vector.multi_reduction <add>, %77, %cst_34 [1] : vector<8x32xf32> to vector<8xf32>
    %79 = vector.shape_cast %78 : vector<8xf32> to vector<8x1xf32>
    %cst_35 = arith.constant 3.200000e+01 : f32
    %80 = vector.broadcast %cst_35 : f32 to vector<8x1xf32>
    %81 = arith.divf %79, %80 : vector<8x1xf32>
    %82 = arith.mulf %77, %77 : vector<8x32xf32>
    %cst_36 = arith.constant dense<0.000000e+00> : vector<8xf32>
    %83 = vector.multi_reduction <add>, %82, %cst_36 [1] : vector<8x32xf32> to vector<8xf32>
    %84 = vector.shape_cast %83 : vector<8xf32> to vector<8x1xf32>
    %cst_37 = arith.constant 3.200000e+01 : f32
    %85 = vector.broadcast %cst_37 : f32 to vector<8x1xf32>
    %86 = arith.divf %84, %85 : vector<8x1xf32>
    %87 = vector.broadcast %81 : vector<8x1xf32> to vector<8x32xf32>
    %88 = arith.subf %77, %87 : vector<8x32xf32>
    %89 = arith.mulf %81, %81 : vector<8x1xf32>
    %90 = arith.subf %86, %89 : vector<8x1xf32>
    %cst_38 = arith.constant 9.99999974E-6 : f32
    %91 = vector.broadcast %cst_38 : f32 to vector<8x1xf32>
    %92 = arith.addf %90, %91 : vector<8x1xf32>
    %93 = math.rsqrt %92 : vector<8x1xf32>
    %94 = vector.broadcast %93 : vector<8x1xf32> to vector<8x32xf32>
    %95 = arith.mulf %88, %94 : vector<8x32xf32>
    %96 = arith.mulf %95, %70 : vector<8x32xf32>
    %97 = arith.addf %96, %71 : vector<8x32xf32>
    %cst_39 = arith.constant 0.000000e+00 : f32
    %98 = vector.broadcast %cst_39 : f32 to vector<8x32xf32>
    %99 = arith.cmpf oge, %97, %98 : vector<8x32xf32>
    %cst_40 = arith.constant 2.000000e-01 : f32
    %100 = vector.broadcast %cst_40 : f32 to vector<8x32xf32>
    %101 = arith.mulf %100, %97 : vector<8x32xf32>
    %102 = arith.select %99, %97, %101 : vector<8x32xi1>, vector<8x32xf32>
    %c232 = arith.constant 232 : index
    %c0_41 = arith.constant 0 : index
    %103 = vector.load %arg3[%c232, %c0_41] : memref<296x32xf32, #tpu.memory_space<vmem>>, vector<8x32xf32>
    %c240 = arith.constant 240 : index
    %c0_42 = arith.constant 0 : index
    %104 = vector.load %arg3[%c240, %c0_42] : memref<296x32xf32, #tpu.memory_space<vmem>>, vector<8x32xf32>
    %c248 = arith.constant 248 : index
    %c0_43 = arith.constant 0 : index
    %105 = vector.load %arg3[%c248, %c0_43] : memref<296x32xf32, #tpu.memory_space<vmem>>, vector<8x32xf32>
    %c256 = arith.constant 256 : index
    %c0_44 = arith.constant 0 : index
    %106 = vector.load %arg3[%c256, %c0_44] : memref<296x32xf32, #tpu.memory_space<vmem>>, vector<8x32xf32>
    %c72 = arith.constant 72 : index
    %c0_45 = arith.constant 0 : index
    %107 = vector.load %arg3[%c72, %c0_45] : memref<296x32xf32, #tpu.memory_space<vmem>>, vector<32x32xf32>
    %cst_46 = arith.constant dense<0.000000e+00> : vector<8x32xf32>
    %108 = tpu.matmul %102, %107, %cst_46 {dimension_numbers = #tpu.dot_dimension_numbers<[1], [0], [0], [1], [0, 0, 1, 1], [], []>} : vector<8x32xf32>, vector<32x32xf32>, vector<8x32xf32> -> vector<8x32xf32>
    %109 = arith.mulf %3, %106 : vector<8x32xf32>
    %110 = arith.addf %109, %103 : vector<8x32xf32>
    %111 = arith.addf %108, %110 : vector<8x32xf32>
    %cst_47 = arith.constant dense<0.000000e+00> : vector<8xf32>
    %112 = vector.multi_reduction <add>, %111, %cst_47 [1] : vector<8x32xf32> to vector<8xf32>
    %113 = vector.shape_cast %112 : vector<8xf32> to vector<8x1xf32>
    %cst_48 = arith.constant 3.200000e+01 : f32
    %114 = vector.broadcast %cst_48 : f32 to vector<8x1xf32>
    %115 = arith.divf %113, %114 : vector<8x1xf32>
    %116 = arith.mulf %111, %111 : vector<8x32xf32>
    %cst_49 = arith.constant dense<0.000000e+00> : vector<8xf32>
    %117 = vector.multi_reduction <add>, %116, %cst_49 [1] : vector<8x32xf32> to vector<8xf32>
    %118 = vector.shape_cast %117 : vector<8xf32> to vector<8x1xf32>
    %cst_50 = arith.constant 3.200000e+01 : f32
    %119 = vector.broadcast %cst_50 : f32 to vector<8x1xf32>
    %120 = arith.divf %118, %119 : vector<8x1xf32>
    %121 = vector.broadcast %115 : vector<8x1xf32> to vector<8x32xf32>
    %122 = arith.subf %111, %121 : vector<8x32xf32>
    %123 = arith.mulf %115, %115 : vector<8x1xf32>
    %124 = arith.subf %120, %123 : vector<8x1xf32>
    %cst_51 = arith.constant 9.99999974E-6 : f32
    %125 = vector.broadcast %cst_51 : f32 to vector<8x1xf32>
    %126 = arith.addf %124, %125 : vector<8x1xf32>
    %127 = math.rsqrt %126 : vector<8x1xf32>
    %128 = vector.broadcast %127 : vector<8x1xf32> to vector<8x32xf32>
    %129 = arith.mulf %122, %128 : vector<8x32xf32>
    %130 = arith.mulf %129, %104 : vector<8x32xf32>
    %131 = arith.addf %130, %105 : vector<8x32xf32>
    %cst_52 = arith.constant 0.000000e+00 : f32
    %132 = vector.broadcast %cst_52 : f32 to vector<8x32xf32>
    %133 = arith.cmpf oge, %131, %132 : vector<8x32xf32>
    %cst_53 = arith.constant 2.000000e-01 : f32
    %134 = vector.broadcast %cst_53 : f32 to vector<8x32xf32>
    %135 = arith.mulf %134, %131 : vector<8x32xf32>
    %136 = arith.select %133, %131, %135 : vector<8x32xi1>, vector<8x32xf32>
    %c264 = arith.constant 264 : index
    %c0_54 = arith.constant 0 : index
    %137 = vector.load %arg3[%c264, %c0_54] : memref<296x32xf32, #tpu.memory_space<vmem>>, vector<8x32xf32>
    %c272 = arith.constant 272 : index
    %c0_55 = arith.constant 0 : index
    %138 = vector.load %arg3[%c272, %c0_55] : memref<296x32xf32, #tpu.memory_space<vmem>>, vector<8x32xf32>
    %c280 = arith.constant 280 : index
    %c0_56 = arith.constant 0 : index
    %139 = vector.load %arg3[%c280, %c0_56] : memref<296x32xf32, #tpu.memory_space<vmem>>, vector<8x32xf32>
    %c288 = arith.constant 288 : index
    %c0_57 = arith.constant 0 : index
    %140 = vector.load %arg3[%c288, %c0_57] : memref<296x32xf32, #tpu.memory_space<vmem>>, vector<8x32xf32>
    %c104 = arith.constant 104 : index
    %c0_58 = arith.constant 0 : index
    %141 = vector.load %arg3[%c104, %c0_58] : memref<296x32xf32, #tpu.memory_space<vmem>>, vector<32x32xf32>
    %cst_59 = arith.constant dense<0.000000e+00> : vector<8x32xf32>
    %142 = tpu.matmul %136, %141, %cst_59 {dimension_numbers = #tpu.dot_dimension_numbers<[1], [0], [0], [1], [0, 0, 1, 1], [], []>} : vector<8x32xf32>, vector<32x32xf32>, vector<8x32xf32> -> vector<8x32xf32>
    %143 = arith.mulf %3, %140 : vector<8x32xf32>
    %144 = arith.addf %143, %137 : vector<8x32xf32>
    %145 = arith.addf %142, %144 : vector<8x32xf32>
    %cst_60 = arith.constant dense<0.000000e+00> : vector<8xf32>
    %146 = vector.multi_reduction <add>, %145, %cst_60 [1] : vector<8x32xf32> to vector<8xf32>
    %147 = vector.shape_cast %146 : vector<8xf32> to vector<8x1xf32>
    %cst_61 = arith.constant 3.200000e+01 : f32
    %148 = vector.broadcast %cst_61 : f32 to vector<8x1xf32>
    %149 = arith.divf %147, %148 : vector<8x1xf32>
    %150 = arith.mulf %145, %145 : vector<8x32xf32>
    %cst_62 = arith.constant dense<0.000000e+00> : vector<8xf32>
    %151 = vector.multi_reduction <add>, %150, %cst_62 [1] : vector<8x32xf32> to vector<8xf32>
    %152 = vector.shape_cast %151 : vector<8xf32> to vector<8x1xf32>
    %cst_63 = arith.constant 3.200000e+01 : f32
    %153 = vector.broadcast %cst_63 : f32 to vector<8x1xf32>
    %154 = arith.divf %152, %153 : vector<8x1xf32>
    %155 = vector.broadcast %149 : vector<8x1xf32> to vector<8x32xf32>
    %156 = arith.subf %145, %155 : vector<8x32xf32>
    %157 = arith.mulf %149, %149 : vector<8x1xf32>
    %158 = arith.subf %154, %157 : vector<8x1xf32>
    %cst_64 = arith.constant 9.99999974E-6 : f32
    %159 = vector.broadcast %cst_64 : f32 to vector<8x1xf32>
    %160 = arith.addf %158, %159 : vector<8x1xf32>
    %161 = math.rsqrt %160 : vector<8x1xf32>
    %162 = vector.broadcast %161 : vector<8x1xf32> to vector<8x32xf32>
    %163 = arith.mulf %156, %162 : vector<8x32xf32>
    %164 = arith.mulf %163, %138 : vector<8x32xf32>
    %165 = arith.addf %164, %139 : vector<8x32xf32>
    %cst_65 = arith.constant 0.000000e+00 : f32
    %166 = vector.broadcast %cst_65 : f32 to vector<8x32xf32>
    %167 = arith.cmpf oge, %165, %166 : vector<8x32xf32>
    %cst_66 = arith.constant 2.000000e-01 : f32
    %168 = vector.broadcast %cst_66 : f32 to vector<8x32xf32>
    %169 = arith.mulf %168, %165 : vector<8x32xf32>
    %170 = arith.select %167, %165, %169 : vector<8x32xi1>, vector<8x32xf32>
    %c0_67 = arith.constant 0 : index
    %c0_68 = arith.constant 0 : index
    %171 = vector.load %arg4[%c0_67, %c0_68] : memref<40x32xf32, #tpu.memory_space<vmem>>, vector<32x32xf32>
    %cst_69 = arith.constant dense<0.000000e+00> : vector<8x32xf32>
    %172 = tpu.matmul %170, %171, %cst_69 {dimension_numbers = #tpu.dot_dimension_numbers<[1], [0], [0], [1], [0, 0, 1, 1], [], []>} : vector<8x32xf32>, vector<32x32xf32>, vector<8x32xf32> -> vector<8x32xf32>
    %c32 = arith.constant 32 : index
    %c0_70 = arith.constant 0 : index
    %173 = vector.load %arg4[%c32, %c0_70] : memref<40x32xf32, #tpu.memory_space<vmem>>, vector<8x32xf32>
    %174 = arith.addf %172, %173 : vector<8x32xf32>
    %c0_71 = arith.constant 0 : index
    %c0_72 = arith.constant 0 : index
    %175 = vector.load %arg2[%c0_71, %c0_72] : memref<8x32xf32, #tpu.memory_space<vmem>>, vector<8x32xf32>
    %176 = arith.addf %174, %175 : vector<8x32xf32>
    %177 = tpu.iota {dimensions = array<i32: 1>} : vector<8x32xi32>
    %cst_73 = arith.constant 0.000000e+00 : f32
    %178 = vector.broadcast %cst_73 : f32 to vector<8x32xf32>
    %c0_i32 = arith.constant 0 : i32
    %179 = vector.broadcast %c0_i32 : i32 to vector<8x32xi32>
    %180 = arith.cmpi sge, %177, %179 : vector<8x32xi32>
    %c4_i32 = arith.constant 4 : i32
    %181 = vector.broadcast %c4_i32 : i32 to vector<8x32xi32>
    %182 = arith.cmpi slt, %177, %181 : vector<8x32xi32>
    %183 = arith.andi %180, %182 : vector<8x32xi1>
    %cst_74 = arith.constant -1.000000e+30 : f32
    %184 = vector.broadcast %cst_74 : f32 to vector<8x32xf32>
    %185 = arith.select %183, %176, %184 : vector<8x32xi1>, vector<8x32xf32>
    %cst_75 = arith.constant dense<0xFF800000> : vector<8xf32>
    %186 = vector.multi_reduction <maximumf>, %185, %cst_75 [1] : vector<8x32xf32> to vector<8xf32>
    %187 = vector.shape_cast %186 : vector<8xf32> to vector<8x1xf32>
    %188 = vector.broadcast %187 : vector<8x1xf32> to vector<8x32xf32>
    %189 = arith.cmpf oeq, %176, %188 : vector<8x32xf32>
    %190 = arith.andi %183, %189 : vector<8x32xi1>
    %cst_76 = arith.constant 1.000000e+00 : f32
    %cst_77 = arith.constant 0.000000e+00 : f32
    %191 = vector.broadcast %cst_76 : f32 to vector<8x32xf32>
    %192 = vector.broadcast %cst_77 : f32 to vector<8x32xf32>
    %193 = arith.select %190, %191, %192 : vector<8x32xi1>, vector<8x32xf32>
    %194 = arith.addf %178, %193 : vector<8x32xf32>
    %c4_i32_78 = arith.constant 4 : i32
    %195 = vector.broadcast %c4_i32_78 : i32 to vector<8x32xi32>
    %196 = arith.cmpi sge, %177, %195 : vector<8x32xi32>
    %c8_i32 = arith.constant 8 : i32
    %197 = vector.broadcast %c8_i32 : i32 to vector<8x32xi32>
    %198 = arith.cmpi slt, %177, %197 : vector<8x32xi32>
    %199 = arith.andi %196, %198 : vector<8x32xi1>
    %cst_79 = arith.constant -1.000000e+30 : f32
    %200 = vector.broadcast %cst_79 : f32 to vector<8x32xf32>
    %201 = arith.select %199, %176, %200 : vector<8x32xi1>, vector<8x32xf32>
    %cst_80 = arith.constant dense<0xFF800000> : vector<8xf32>
    %202 = vector.multi_reduction <maximumf>, %201, %cst_80 [1] : vector<8x32xf32> to vector<8xf32>
    %203 = vector.shape_cast %202 : vector<8xf32> to vector<8x1xf32>
    %204 = vector.broadcast %203 : vector<8x1xf32> to vector<8x32xf32>
    %205 = arith.cmpf oeq, %176, %204 : vector<8x32xf32>
    %206 = arith.andi %199, %205 : vector<8x32xi1>
    %cst_81 = arith.constant 1.000000e+00 : f32
    %cst_82 = arith.constant 0.000000e+00 : f32
    %207 = vector.broadcast %cst_81 : f32 to vector<8x32xf32>
    %208 = vector.broadcast %cst_82 : f32 to vector<8x32xf32>
    %209 = arith.select %206, %207, %208 : vector<8x32xi1>, vector<8x32xf32>
    %210 = arith.addf %194, %209 : vector<8x32xf32>
    %c8_i32_83 = arith.constant 8 : i32
    %211 = vector.broadcast %c8_i32_83 : i32 to vector<8x32xi32>
    %212 = arith.cmpi sge, %177, %211 : vector<8x32xi32>
    %c12_i32 = arith.constant 12 : i32
    %213 = vector.broadcast %c12_i32 : i32 to vector<8x32xi32>
    %214 = arith.cmpi slt, %177, %213 : vector<8x32xi32>
    %215 = arith.andi %212, %214 : vector<8x32xi1>
    %cst_84 = arith.constant -1.000000e+30 : f32
    %216 = vector.broadcast %cst_84 : f32 to vector<8x32xf32>
    %217 = arith.select %215, %176, %216 : vector<8x32xi1>, vector<8x32xf32>
    %cst_85 = arith.constant dense<0xFF800000> : vector<8xf32>
    %218 = vector.multi_reduction <maximumf>, %217, %cst_85 [1] : vector<8x32xf32> to vector<8xf32>
    %219 = vector.shape_cast %218 : vector<8xf32> to vector<8x1xf32>
    %220 = vector.broadcast %219 : vector<8x1xf32> to vector<8x32xf32>
    %221 = arith.cmpf oeq, %176, %220 : vector<8x32xf32>
    %222 = arith.andi %215, %221 : vector<8x32xi1>
    %cst_86 = arith.constant 1.000000e+00 : f32
    %cst_87 = arith.constant 0.000000e+00 : f32
    %223 = vector.broadcast %cst_86 : f32 to vector<8x32xf32>
    %224 = vector.broadcast %cst_87 : f32 to vector<8x32xf32>
    %225 = arith.select %222, %223, %224 : vector<8x32xi1>, vector<8x32xf32>
    %226 = arith.addf %210, %225 : vector<8x32xf32>
    %c12_i32_88 = arith.constant 12 : i32
    %227 = vector.broadcast %c12_i32_88 : i32 to vector<8x32xi32>
    %228 = arith.cmpi sge, %177, %227 : vector<8x32xi32>
    %c16_i32 = arith.constant 16 : i32
    %229 = vector.broadcast %c16_i32 : i32 to vector<8x32xi32>
    %230 = arith.cmpi slt, %177, %229 : vector<8x32xi32>
    %231 = arith.andi %228, %230 : vector<8x32xi1>
    %cst_89 = arith.constant -1.000000e+30 : f32
    %232 = vector.broadcast %cst_89 : f32 to vector<8x32xf32>
    %233 = arith.select %231, %176, %232 : vector<8x32xi1>, vector<8x32xf32>
    %cst_90 = arith.constant dense<0xFF800000> : vector<8xf32>
    %234 = vector.multi_reduction <maximumf>, %233, %cst_90 [1] : vector<8x32xf32> to vector<8xf32>
    %235 = vector.shape_cast %234 : vector<8xf32> to vector<8x1xf32>
    %236 = vector.broadcast %235 : vector<8x1xf32> to vector<8x32xf32>
    %237 = arith.cmpf oeq, %176, %236 : vector<8x32xf32>
    %238 = arith.andi %231, %237 : vector<8x32xi1>
    %cst_91 = arith.constant 1.000000e+00 : f32
    %cst_92 = arith.constant 0.000000e+00 : f32
    %239 = vector.broadcast %cst_91 : f32 to vector<8x32xf32>
    %240 = vector.broadcast %cst_92 : f32 to vector<8x32xf32>
    %241 = arith.select %238, %239, %240 : vector<8x32xi1>, vector<8x32xf32>
    %242 = arith.addf %226, %241 : vector<8x32xf32>
    %c16_i32_93 = arith.constant 16 : i32
    %243 = vector.broadcast %c16_i32_93 : i32 to vector<8x32xi32>
    %244 = arith.cmpi sge, %177, %243 : vector<8x32xi32>
    %c20_i32 = arith.constant 20 : i32
    %245 = vector.broadcast %c20_i32 : i32 to vector<8x32xi32>
    %246 = arith.cmpi slt, %177, %245 : vector<8x32xi32>
    %247 = arith.andi %244, %246 : vector<8x32xi1>
    %cst_94 = arith.constant -1.000000e+30 : f32
    %248 = vector.broadcast %cst_94 : f32 to vector<8x32xf32>
    %249 = arith.select %247, %176, %248 : vector<8x32xi1>, vector<8x32xf32>
    %cst_95 = arith.constant dense<0xFF800000> : vector<8xf32>
    %250 = vector.multi_reduction <maximumf>, %249, %cst_95 [1] : vector<8x32xf32> to vector<8xf32>
    %251 = vector.shape_cast %250 : vector<8xf32> to vector<8x1xf32>
    %252 = vector.broadcast %251 : vector<8x1xf32> to vector<8x32xf32>
    %253 = arith.cmpf oeq, %176, %252 : vector<8x32xf32>
    %254 = arith.andi %247, %253 : vector<8x32xi1>
    %cst_96 = arith.constant 1.000000e+00 : f32
    %cst_97 = arith.constant 0.000000e+00 : f32
    %255 = vector.broadcast %cst_96 : f32 to vector<8x32xf32>
    %256 = vector.broadcast %cst_97 : f32 to vector<8x32xf32>
    %257 = arith.select %254, %255, %256 : vector<8x32xi1>, vector<8x32xf32>
    %258 = arith.addf %242, %257 : vector<8x32xf32>
    %c20_i32_98 = arith.constant 20 : i32
    %259 = vector.broadcast %c20_i32_98 : i32 to vector<8x32xi32>
    %260 = arith.cmpi sge, %177, %259 : vector<8x32xi32>
    %c24_i32 = arith.constant 24 : i32
    %261 = vector.broadcast %c24_i32 : i32 to vector<8x32xi32>
    %262 = arith.cmpi slt, %177, %261 : vector<8x32xi32>
    %263 = arith.andi %260, %262 : vector<8x32xi1>
    %cst_99 = arith.constant -1.000000e+30 : f32
    %264 = vector.broadcast %cst_99 : f32 to vector<8x32xf32>
    %265 = arith.select %263, %176, %264 : vector<8x32xi1>, vector<8x32xf32>
    %cst_100 = arith.constant dense<0xFF800000> : vector<8xf32>
    %266 = vector.multi_reduction <maximumf>, %265, %cst_100 [1] : vector<8x32xf32> to vector<8xf32>
    %267 = vector.shape_cast %266 : vector<8xf32> to vector<8x1xf32>
    %268 = vector.broadcast %267 : vector<8x1xf32> to vector<8x32xf32>
    %269 = arith.cmpf oeq, %176, %268 : vector<8x32xf32>
    %270 = arith.andi %263, %269 : vector<8x32xi1>
    %cst_101 = arith.constant 1.000000e+00 : f32
    %cst_102 = arith.constant 0.000000e+00 : f32
    %271 = vector.broadcast %cst_101 : f32 to vector<8x32xf32>
    %272 = vector.broadcast %cst_102 : f32 to vector<8x32xf32>
    %273 = arith.select %270, %271, %272 : vector<8x32xi1>, vector<8x32xf32>
    %274 = arith.addf %258, %273 : vector<8x32xf32>
    %c24_i32_103 = arith.constant 24 : i32
    %275 = vector.broadcast %c24_i32_103 : i32 to vector<8x32xi32>
    %276 = arith.cmpi sge, %177, %275 : vector<8x32xi32>
    %c28_i32 = arith.constant 28 : i32
    %277 = vector.broadcast %c28_i32 : i32 to vector<8x32xi32>
    %278 = arith.cmpi slt, %177, %277 : vector<8x32xi32>
    %279 = arith.andi %276, %278 : vector<8x32xi1>
    %cst_104 = arith.constant -1.000000e+30 : f32
    %280 = vector.broadcast %cst_104 : f32 to vector<8x32xf32>
    %281 = arith.select %279, %176, %280 : vector<8x32xi1>, vector<8x32xf32>
    %cst_105 = arith.constant dense<0xFF800000> : vector<8xf32>
    %282 = vector.multi_reduction <maximumf>, %281, %cst_105 [1] : vector<8x32xf32> to vector<8xf32>
    %283 = vector.shape_cast %282 : vector<8xf32> to vector<8x1xf32>
    %284 = vector.broadcast %283 : vector<8x1xf32> to vector<8x32xf32>
    %285 = arith.cmpf oeq, %176, %284 : vector<8x32xf32>
    %286 = arith.andi %279, %285 : vector<8x32xi1>
    %cst_106 = arith.constant 1.000000e+00 : f32
    %cst_107 = arith.constant 0.000000e+00 : f32
    %287 = vector.broadcast %cst_106 : f32 to vector<8x32xf32>
    %288 = vector.broadcast %cst_107 : f32 to vector<8x32xf32>
    %289 = arith.select %286, %287, %288 : vector<8x32xi1>, vector<8x32xf32>
    %290 = arith.addf %274, %289 : vector<8x32xf32>
    %c28_i32_108 = arith.constant 28 : i32
    %291 = vector.broadcast %c28_i32_108 : i32 to vector<8x32xi32>
    %292 = arith.cmpi sge, %177, %291 : vector<8x32xi32>
    %c32_i32 = arith.constant 32 : i32
    %293 = vector.broadcast %c32_i32 : i32 to vector<8x32xi32>
    %294 = arith.cmpi slt, %177, %293 : vector<8x32xi32>
    %295 = arith.andi %292, %294 : vector<8x32xi1>
    %cst_109 = arith.constant -1.000000e+30 : f32
    %296 = vector.broadcast %cst_109 : f32 to vector<8x32xf32>
    %297 = arith.select %295, %176, %296 : vector<8x32xi1>, vector<8x32xf32>
    %cst_110 = arith.constant dense<0xFF800000> : vector<8xf32>
    %298 = vector.multi_reduction <maximumf>, %297, %cst_110 [1] : vector<8x32xf32> to vector<8xf32>
    %299 = vector.shape_cast %298 : vector<8xf32> to vector<8x1xf32>
    %300 = vector.broadcast %299 : vector<8x1xf32> to vector<8x32xf32>
    %301 = arith.cmpf oeq, %176, %300 : vector<8x32xf32>
    %302 = arith.andi %295, %301 : vector<8x32xi1>
    %cst_111 = arith.constant 1.000000e+00 : f32
    %cst_112 = arith.constant 0.000000e+00 : f32
    %303 = vector.broadcast %cst_111 : f32 to vector<8x32xf32>
    %304 = vector.broadcast %cst_112 : f32 to vector<8x32xf32>
    %305 = arith.select %302, %303, %304 : vector<8x32xi1>, vector<8x32xf32>
    %306 = arith.addf %290, %305 : vector<8x32xf32>
    %c0_113 = arith.constant 0 : index
    %c0_114 = arith.constant 0 : index
    %307 = vector.load %arg5[%c0_113, %c0_114] : memref<8x32xf32, #tpu.memory_space<vmem>>, vector<8x32xf32>
    tpu.vector_store %arg5[%c0_113, %c0_114], %306 {strides = array<i32>} : memref<8x32xf32, #tpu.memory_space<vmem>>, vector<8x32xf32>,
    return
  }
}

</mosaic_0001>

<bundles_post_ra>
// kernel: tpu_custom_call.1
= control target key start
LH: loop header
LB: loop body
LE: loop exit
PB: predicated region body
PF: predicated region fallthrough
CT: control target
= control target key end

     0   :  { %vm35_vm0 = vcmask 64512   ;;  %v856_v2 = vmov 0.0   ;;  %vm857_vm1 = vmmov 0   ;;  %v858_v4 = vmov 0   ;;  %s1176_s0 = inlined_call_operand.vmem [shape: f32[8,8], index: 0, kind: input, shape index: {}]   ;;  %s1177_s1 = inlined_call_operand.vmem [shape: f32[8,1], index: 1, kind: input, shape index: {}]   ;;  %s1178_s2 = inlined_call_operand.vmem [shape: f32[8,32], index: 2, kind: input, shape index: {}]   ;;  %s1179_s3 = inlined_call_operand.vmem [shape: f32[296,32], index: 3, kind: input, shape index: {}]   ;;  %s1180_s4 = inlined_call_operand.vmem [shape: f32[40,32], index: 4, kind: input, shape index: {}]   ;;  %s1181_s5 = inlined_call_operand.hbm [shape: f32[8,32], index: 5, kind: output, shape index: {}]  }
   0x1   :  { %v32_v0 = vld [vmem:[%s1179_s3] sm:$0xff]  ;;  %759 = vmatprep.subr.mxu0 %v856_v2  ;;  %761 = vmatprep.mubr.msk.f32.mxu0 %vm857_vm1, %v856_v2 }
   0x2   :  { %v21_v1 = vld [vmem:[%s1176_s0] sm:$0xff]  ;;  %760 = vmatpush3.msra.mxu0 %v32_v0  ;;  %823 = vset.pattern.permute.xlu0 %v858_v4 }
   0x3   :  { %v22_v3 = vld [vmem:[%s1177_s1] sm:$0xff] }
   0x4   :  { %10 = vsyncpa [#allocation3], 0  ;;  %762 = vmatmul.mubr.msk.f32.vlgmr.msra.gmra.mxu0 %vm35_vm0, %v21_v1  ;;  %25 = vperm.xlu0 %823, %v22_v3   ;;  %v31_v6 = vld [vmem:[%s1179_s3 + $0xa0] sm:$0xff]  ;;  %v28_v8 = vld [vmem:[%s1179_s3 + $0x88] sm:$0xff]  ;;  %vm1182_vm2 = vcmask 261120  }
   0x5   :  { %764 = vmatprep.subr.mxu1 %v856_v2  ;;  %772 = vmatprep.mubr.msk.f32.mxu1 %vm857_vm1, %v856_v2  ;;  %v136_v16 = vld [vmem:[%s1179_s3 + $0x20] sm:$0xff]  ;;  %v135_v17 = vld [vmem:[%s1179_s3 + $0x18] sm:$0xff]  ;;  %v134_v18 = vld [vmem:[%s1179_s3 + $0x10] sm:$0xff] }
   0x6   :  { %775 = vmatprep.subr.mxu0 %v856_v2  ;;  %783 = vmatprep.mubr.msk.f32.mxu0 %vm857_vm1, %v856_v2  ;;  %v133_v19 = vld [vmem:[%s1179_s3 + $0x8] sm:$0xff]  ;;  %v29_v29 = vld [vmem:[%s1179_s3 + $0x90] sm:$0xff]  ;;  %v30_v31 = vld [vmem:[%s1179_s3 + $0x98] sm:$0xff] }
   0x7   :  { %765 = vmatpush3.msra.mxu1 %v136_v16  ;;  %v132_v35 = vld [vmem:[%s1179_s3 + $0xc0] sm:$0xff]  ;;  %v129_v37 = vld [vmem:[%s1179_s3 + $0xa8] sm:$0xff]  ;;  %v238_v46 = vld [vmem:[%s1179_s3 + $0x38] sm:$0xff] }
   0x8   :  { %766 = vmatprep.subr.mxu1 %v856_v2  ;;  %v239_v45 = vld [vmem:[%s1179_s3 + $0x40] sm:$0xff]  ;;  %v237_v47 = vld [vmem:[%s1179_s3 + $0x30] sm:$0xff]  ;;  %v236_v48 = vld [vmem:[%s1179_s3 + $0x28] sm:$0xff] }
   0x9   :  { %767 = vmatpush3.msra.mxu1 %v135_v17  ;;  %776 = vmatpush3.msra.mxu0 %v239_v45  ;;  %v130_v58 = vld [vmem:[%s1179_s3 + $0xb0] sm:$0xff]  ;;  %v131_v60 = vld [vmem:[%s1179_s3 + $0xb8] sm:$0xff]  ;;  %v235_v1 = vld [vmem:[%s1179_s3 + $0xe0] sm:$0xff] }
   0xa   :  { %768 = vmatprep.subr.mxu1 %v856_v2  ;;  %777 = vmatprep.subr.mxu0 %v856_v2  ;;  %v232_v4 = vld [vmem:[%s1179_s3 + $0xc8] sm:$0xff]  ;;  %v443_v45 = vld [vmem:[%s1179_s3 + $0x70] sm:$0xff] }
   0xb   :  { %769 = vmatpush3.msra.mxu1 %v134_v18  ;;  %778 = vmatpush3.msra.mxu0 %v238_v46  ;;  %v339_v16 = vld [vmem:[%s1179_s3 + $0x48] sm:$0xff] }
   0xc   :  { %770 = vmatprep.subr.mxu1 %v856_v2  ;;  %779 = vmatprep.subr.mxu0 %v856_v2  ;;  %v442_v46 = vld [vmem:[%s1179_s3 + $0x68] sm:$0xff] }
   0xd   :  { %771 = vmatpush3.msra.mxu1 %v133_v19  ;;  %780 = vmatpush3.msra.mxu0 %v237_v47 }
   0xe   :  { %786 = vmatprep.subr.mxu1 %v856_v2  ;;  %781 = vmatprep.subr.mxu0 %v856_v2 }
   0xf   :  { %782 = vmatpush3.msra.mxu0 %v236_v48 }
  0x10   :  { %797 = vmatprep.subr.mxu0 %v856_v2 }
  0x7f   :  { %v908_v5 = vpop.permute.xlu0 %25 }
  0x80   :  { %v33_v7 = vmul.f32 %v31_v6, %v908_v5  ;;  %v137_v36 = vmul.f32 %v132_v35, %v908_v5  ;;  %v240_v3 = vmul.f32 %v235_v1, %v908_v5  ;;  %v335_v35 = vld [vmem:[%s1179_s3 + $0xe8] sm:$0xff] }
  0x81   :  { %v438_v1 = vld [vmem:[%s1179_s3 + $0x108] sm:$0xff] }
  0x82   :  { %v34_v9 = vadd.f32 %v33_v7, %v28_v8  ;;  %v138_v38 = vadd.f32 %v137_v36, %v129_v37  ;;  %v241_v6 = vadd.f32 %v240_v3, %v232_v4 }
  0xc4   :  { %v105_v10 = vpop.f32.mrf.mxu0 }
  0xc5   :  { %v106_v11 = vadd.f32 %v105_v10, %v34_v9 }
  0xc6   :  { %v763_v12 = vpop.f32.mrf.mxu0 }
  0xc7   :  { %v110_v13 = vsel %vm1182_vm2, %v106_v11, 0.0  ;;  %v115_v14 = vmul.f32 %v106_v11, %v106_v11 }
  0xc8   :  { %111 = vadd.xlane.f32.xlu0 %v110_v13  ;;  %v342_v13 = vld [vmem:[%s1179_s3 + $0x60] sm:$0xff] }
  0xc9   :  { %v116_v15 = vsel %vm1182_vm2, %v115_v14, 0.0  ;;  %v341_v14 = vld [vmem:[%s1179_s3 + $0x58] sm:$0xff] }
  0xca   :  { %117 = vadd.xlane.f32.xlu1 %v116_v15  ;;  %v340_v15 = vld [vmem:[%s1179_s3 + $0x50] sm:$0xff] }
 0x151   :  { %v112_v20 = vpop.xlane.xlu0 %111 }
 0x152   :  { %v114_v21 = vmul.f32 0.03125, %v112_v20 }
 0x153   :  { %v118_v22 = vpop.xlane.xlu1 %117 }
 0x154   :  { %v121_v23 = vmul.f32 %v114_v21, %v114_v21  ;;  %v119_v24 = vmul.f32 0.03125, %v118_v22  ;;  %v120_v27 = vsub.f32 %v106_v11, %v114_v21 }
 0x156   :  { %v122_v25 = vsub.f32 %v119_v24, %v121_v23 }
 0x158   :  { %v123_v26 = vadd.f32 1e-05, %v122_v25 }
 0x15a   :  { %824 = vrsqrt.f32 %v123_v26  ;;  %v233_v26 = vld [vmem:[%s1179_s3 + $0xd0] sm:$0xff] }
 0x167   :  { %v825_v28 = vpop.eup %824 }
 0x168   :  { %v125_v30 = vmul.f32 %v825_v28, %v120_v27  ;;  %v234_v28 = vld [vmem:[%s1179_s3 + $0xd8] sm:$0xff] }
 0x16a   :  { %v126_v32 = vmul.f32 %v125_v30, %v29_v29 }
 0x16c   :  { %v127_v33 = vadd.f32 %v126_v32, %v30_v31 }
 0x16e   :  { %v128_v34 = vmax.f32 %v127_v33, 0.0  ;;  %v338_v33 = vld [vmem:[%s1179_s3 + $0x100] sm:$0xff] }
 0x170   :  { %773 = vmatmul.mubr.msk.f32.vlgmr.msra.gmra.mxu1 %vm1182_vm2, %v128_v34  ;;  %v343_v34 = vmul.f32 %v338_v33, %v908_v5 }
 0x171   :  { %794 = vmatprep.mubr.msk.f32.mxu1 %vm857_vm1, %v856_v2  ;;  %787 = vmatpush3.msra.mxu1 %v342_v13  ;;  %v541_v13 = vld [vmem:[%s1180_s4] sm:$0xff] }
 0x172   :  { %788 = vmatprep.subr.mxu1 %v856_v2  ;;  %v344_v36 = vadd.f32 %v343_v34, %v335_v35  ;;  %v619_v34 = vld [vmem:[%s1178_s2] sm:$0xff]  ;;  %s859_s2 = smov [#allocation2]  }
 0x173   :  { %789 = vmatpush3.msra.mxu1 %v341_v14 }
 0x174   :  { %790 = vmatprep.subr.mxu1 %v856_v2 }
 0x175   :  { %791 = vmatpush3.msra.mxu1 %v340_v15 }
 0x176   :  { %792 = vmatprep.subr.mxu1 %v856_v2 }
 0x177   :  { %793 = vmatpush3.msra.mxu1 %v339_v16 }
 0x178   :  { %808 = vmatprep.subr.mxu1 %v856_v2 }
 0x230   :  { %v208_v39 = vpop.f32.mrf.mxu1 }
 0x231   :  { %v209_v40 = vadd.f32 %v208_v39, %v138_v38 }
 0x232   :  { %v774_v41 = vpop.f32.mrf.mxu1 }
 0x233   :  { %v212_v42 = vsel %vm1182_vm2, %v209_v40, 0.0  ;;  %v216_v43 = vmul.f32 %v209_v40, %v209_v40 }
 0x234   :  { %213 = vadd.xlane.f32.xlu1 %v212_v42 }
 0x235   :  { %v217_v44 = vsel %vm1182_vm2, %v216_v43, 0.0  ;;  %v445_v43 = vld [vmem:[%s1179_s3 + $0x80] sm:$0xff] }
 0x238   :  { %218 = vadd.xlane.f32.xlu1 %v217_v44  ;;  %v444_v44 = vld [vmem:[%s1179_s3 + $0x78] sm:$0xff] }
 0x2bd   :  { %v214_v49 = vpop.xlane.xlu1 %213 }
 0x2be   :  { %v215_v50 = vmul.f32 0.03125, %v214_v49 }
 0x2c0   :  { %v222_v52 = vmul.f32 %v215_v50, %v215_v50  ;;  %v221_v56 = vsub.f32 %v209_v40, %v215_v50 }
 0x2c1   :  { %v219_v51 = vpop.xlane.xlu1 %218 }
 0x2c2   :  { %v220_v53 = vmul.f32 0.03125, %v219_v51 }
 0x2c4   :  { %v223_v54 = vsub.f32 %v220_v53, %v222_v52 }
 0x2c6   :  { %v224_v55 = vadd.f32 1e-05, %v223_v54 }
 0x2c8   :  { %826 = vrsqrt.f32 %v224_v55 }
 0x2d5   :  { %v827_v57 = vpop.eup %826 }
 0x2d6   :  { %v226_v59 = vmul.f32 %v827_v57, %v221_v56  ;;  %v336_v56 = vld [vmem:[%s1179_s3 + $0xf0] sm:$0xff] }
 0x2d8   :  { %v227_v61 = vmul.f32 %v226_v59, %v130_v58  ;;  %v337_v58 = vld [vmem:[%s1179_s3 + $0xf8] sm:$0xff] }
 0x2da   :  { %v228_v62 = vadd.f32 %v227_v61, %v131_v60 }
 0x2dc   :  { %vm229_vm3 = vcmp.ge.f32.partialorder %v228_v62, 0.0  ;;  %v230_v63 = vmul.f32 0.2, %v228_v62 }
 0x2de   :  { %v231_v0 = vsel %vm229_vm3, %v228_v62, %v230_v63  ;;  %v441_v63 = vld [vmem:[%s1179_s3 + $0x120] sm:$0xff] }
 0x2df   :  { %784 = vmatmul.mubr.msk.f32.vlgmr.msra.gmra.mxu0 %vm1182_vm2, %v231_v0  ;;  %v446_v0 = vmul.f32 %v441_v63, %v908_v5  ;;  %v543_v5 = vld [vmem:[%s1180_s4 + $0x10] sm:$0xff] }
 0x2e0   :  { %805 = vmatprep.mubr.msk.f32.mxu0 %vm857_vm1, %v856_v2  ;;  %798 = vmatpush3.msra.mxu0 %v445_v43 }
 0x2e1   :  { %799 = vmatprep.subr.mxu0 %v856_v2  ;;  %v447_v3 = vadd.f32 %v446_v0, %v438_v1 }
 0x2e2   :  { %800 = vmatpush3.msra.mxu0 %v444_v44 }
 0x2e3   :  { %801 = vmatprep.subr.mxu0 %v856_v2 }
 0x2e4   :  { %802 = vmatpush3.msra.mxu0 %v443_v45 }
 0x2e5   :  { %803 = vmatprep.subr.mxu0 %v856_v2 }
 0x2e6   :  { %804 = vmatpush3.msra.mxu0 %v442_v46 }
 0x39f   :  { %v311_v7 = vpop.f32.mrf.mxu0 }
 0x3a0   :  { %v312_v8 = vadd.f32 %v311_v7, %v241_v6 }
 0x3a1   :  { %v785_v9 = vpop.f32.mrf.mxu0 }
 0x3a2   :  { %v315_v10 = vsel %vm1182_vm2, %v312_v8, 0.0  ;;  %v319_v11 = vmul.f32 %v312_v8, %v312_v8 }
 0x3a3   :  { %316 = vadd.xlane.f32.xlu1 %v315_v10 }
 0x3a4   :  { %v320_v12 = vsel %vm1182_vm2, %v319_v11, 0.0  ;;  %v544_v11 = vld [vmem:[%s1180_s4 + $0x18] sm:$0xff] }
 0x3a7   :  { %321 = vadd.xlane.f32.xlu1 %v320_v12  ;;  %v542_v12 = vld [vmem:[%s1180_s4 + $0x8] sm:$0xff] }
 0x42c   :  { %v317_v17 = vpop.xlane.xlu1 %316 }
 0x42d   :  { %v318_v18 = vmul.f32 0.03125, %v317_v17 }
 0x42f   :  { %v325_v20 = vmul.f32 %v318_v18, %v318_v18  ;;  %v324_v24 = vsub.f32 %v312_v8, %v318_v18 }
 0x430   :  { %v322_v19 = vpop.xlane.xlu1 %321 }
 0x431   :  { %v323_v21 = vmul.f32 0.03125, %v322_v19 }
 0x433   :  { %v326_v22 = vsub.f32 %v323_v21, %v325_v20 }
 0x435   :  { %v327_v23 = vadd.f32 1e-05, %v326_v22 }
 0x437   :  { %828 = vrsqrt.f32 %v327_v23  ;;  %v439_v23 = vld [vmem:[%s1179_s3 + $0x110] sm:$0xff] }
 0x444   :  { %v829_v25 = vpop.eup %828 }
 0x445   :  { %v329_v27 = vmul.f32 %v829_v25, %v324_v24  ;;  %v440_v25 = vld [vmem:[%s1179_s3 + $0x118] sm:$0xff]  ;;  %s718_s3 = sshll.u32 %s859_s2, 4  ;;  %s719_s3 = int_to_ptr.vmem [resolvable:$true] %s718_s3 }
 0x446   :  { %p839_p1 = scmp.lt.s32.totalorder %s719_s3, %s719_s3 }
 0x447   :  { %v330_v29 = vmul.f32 %v329_v27, %v233_v26 }
 0x449   :  { %v331_v30 = vadd.f32 %v330_v29, %v234_v28 }
 0x44b   :  { %vm332_vm4 = vcmp.ge.f32.partialorder %v331_v30, 0.0  ;;  %v333_v31 = vmul.f32 0.2, %v331_v30 }
 0x44d   :  { %v334_v32 = vsel %vm332_vm4, %v331_v30, %v333_v31  ;;  %v621_v30 = vlaneseq }
 0x44e   :  { %795 = vmatmul.mubr.msk.f32.vlgmr.msra.gmra.mxu1 %vm1182_vm2, %v334_v32  ;;  %v545_v32 = vld [vmem:[%s1180_s4 + $0x20] sm:$0xff]  ;;  %s834_s4 = scalar_lea.vmem %s719_s3, 128 }
 0x44f   :  { %816 = vmatprep.mubr.msk.f32.mxu1 %vm857_vm1, %v856_v2  ;;  %809 = vmatpush3.msra.mxu1 %v544_v11  ;;  %v622_v31 = vand.u32 127, %v621_v30  ;;  %p835_p0 = scmp.ne.s32.totalorder %s719_s3, %s834_s4  ;;  %p840_p2 = scmp.lt.s32.totalorder %s834_s4, %s834_s4 }
 0x450   :  { %810 = vmatprep.subr.mxu1 %v856_v2 }
 0x451   :  { %811 = vmatpush3.msra.mxu1 %v543_v5  ;;  %vm634_vm7 = vcmp.ge.s32.totalorder %v622_v31, 4  ;;  %vm635_vm8 = vcmp.lt.s32.totalorder %v622_v31, 8  ;;  %vm656_vm9 = vcmp.ge.s32.totalorder %v622_v31, 12  ;;  %vm657_vm10 = vcmp.lt.s32.totalorder %v622_v31, 16  ;;  %p841_p3 = por %p840_p2, %p839_p1 }
 0x452   :  { %812 = vmatprep.subr.mxu1 %v856_v2  ;;  %vm645_vm11 = vcmp.ge.s32.totalorder %v622_v31, 8  ;;  %vm646_vm12 = vcmp.lt.s32.totalorder %v622_v31, 12  ;;  %vm1080_vm13 = vmand %vm634_vm7, %vm635_vm8  ;;  %vm624_vm14 = vcmp.lt.s32.totalorder %v622_v31, 4  ;;  %vm678_vm1 = vcmp.ge.s32.totalorder %v622_v31, 20 }
 0x453   :  { %813 = vmatpush3.msra.mxu1 %v542_v12  ;;  %vm1086_vm15 = vmand %vm656_vm9, %vm657_vm10  ;;  %vm679_vm3 = vcmp.lt.s32.totalorder %v622_v31, 24  ;;  %vm667_vm4 = vcmp.ge.s32.totalorder %v622_v31, 16  ;;  %vm700_vm8 = vcmp.ge.s32.totalorder %v622_v31, 28  ;;  %vm701_vm9 = vcmp.lt.s32.totalorder %v622_v31, 32  ;;  %p842_p4 = pnand %p841_p3, %p835_p0 }
 0x454   :  { %814 = vmatprep.subr.mxu1 %v856_v2  ;;  %vm1090_vm0 = vmand %vm645_vm11, %vm646_vm12  ;;  %vm689_vm10 = vcmp.ge.s32.totalorder %v622_v31, 24  ;;  %vm690_vm11 = vcmp.lt.s32.totalorder %v622_v31, 28 }
 0x455   :  { %815 = vmatpush3.msra.mxu1 %v541_v13  ;;  %vm1123_vm12 = vmand %vm700_vm8, %vm701_vm9 }
 0x50e   :  { %v414_v37 = vpop.f32.mrf.mxu1 }
 0x50f   :  { %v415_v38 = vadd.f32 %v414_v37, %v344_v36 }
 0x510   :  { %v796_v39 = vpop.f32.mrf.mxu1 }
 0x511   :  { %v418_v40 = vsel %vm1182_vm2, %v415_v38, 0.0  ;;  %v422_v41 = vmul.f32 %v415_v38, %v415_v38 }
 0x512   :  { %419 = vadd.xlane.f32.xlu1 %v418_v40 }
 0x513   :  { %v423_v42 = vsel %vm1182_vm2, %v422_v41, 0.0 }
 0x516   :  { %424 = vadd.xlane.f32.xlu1 %v423_v42 }
 0x59b   :  { %v420_v47 = vpop.xlane.xlu1 %419 }
 0x59c   :  { %v421_v48 = vmul.f32 0.03125, %v420_v47 }
 0x59e   :  { %v428_v50 = vmul.f32 %v421_v48, %v421_v48  ;;  %v427_v54 = vsub.f32 %v415_v38, %v421_v48 }
 0x59f   :  { %v425_v49 = vpop.xlane.xlu1 %424 }
 0x5a0   :  { %v426_v51 = vmul.f32 0.03125, %v425_v49 }
 0x5a2   :  { %v429_v52 = vsub.f32 %v426_v51, %v428_v50 }
 0x5a4   :  { %v430_v53 = vadd.f32 1e-05, %v429_v52 }
 0x5a6   :  { %830 = vrsqrt.f32 %v430_v53 }
 0x5b3   :  { %v831_v55 = vpop.eup %830 }
 0x5b4   :  { %v432_v57 = vmul.f32 %v831_v55, %v427_v54 }
 0x5b6   :  { %v433_v59 = vmul.f32 %v432_v57, %v336_v56 }
 0x5b8   :  { %v434_v60 = vadd.f32 %v433_v59, %v337_v58 }
 0x5ba   :  { %vm435_vm5 = vcmp.ge.f32.partialorder %v434_v60, 0.0  ;;  %v436_v61 = vmul.f32 0.2, %v434_v60 }
 0x5bc   :  { %v437_v62 = vsel %vm435_vm5, %v434_v60, %v436_v61  ;;  %vm668_vm5 = vcmp.lt.s32.totalorder %v622_v31, 20 }
 0x5bd   :  { %806 = vmatmul.mubr.msk.f32.vlgmr.msra.gmra.mxu0 %vm1182_vm2, %v437_v62  ;;  %vm1111_vm7 = vmand %vm667_vm4, %vm668_vm5 }
 0x67d   :  { %v517_v4 = vpop.f32.mrf.mxu0 }
 0x67e   :  { %v518_v6 = vadd.f32 %v517_v4, %v447_v3 }
 0x67f   :  { %v807_v7 = vpop.f32.mrf.mxu0 }
 0x680   :  { %v521_v8 = vsel %vm1182_vm2, %v518_v6, 0.0  ;;  %v525_v9 = vmul.f32 %v518_v6, %v518_v6 }
 0x681   :  { %522 = vadd.xlane.f32.xlu1 %v521_v8 }
 0x682   :  { %v526_v10 = vsel %vm1182_vm2, %v525_v9, 0.0 }
 0x685   :  { %527 = vadd.xlane.f32.xlu1 %v526_v10 }
 0x70a   :  { %v523_v14 = vpop.xlane.xlu1 %522 }
 0x70b   :  { %v524_v15 = vmul.f32 0.03125, %v523_v14 }
 0x70d   :  { %v531_v17 = vmul.f32 %v524_v15, %v524_v15  ;;  %v530_v21 = vsub.f32 %v518_v6, %v524_v15 }
 0x70e   :  { %v528_v16 = vpop.xlane.xlu1 %527 }
 0x70f   :  { %v529_v18 = vmul.f32 0.03125, %v528_v16 }
 0x711   :  { %v532_v19 = vsub.f32 %v529_v18, %v531_v17 }
 0x713   :  { %v533_v20 = vadd.f32 1e-05, %v532_v19 }
 0x715   :  { %832 = vrsqrt.f32 %v533_v20 }
 0x722   :  { %v833_v22 = vpop.eup %832 }
 0x723   :  { %v535_v24 = vmul.f32 %v833_v22, %v530_v21 }
 0x725   :  { %v536_v26 = vmul.f32 %v535_v24, %v439_v23 }
 0x727   :  { %v537_v27 = vadd.f32 %v536_v26, %v440_v25 }
 0x729   :  { %vm538_vm6 = vcmp.ge.f32.partialorder %v537_v27, 0.0  ;;  %v539_v28 = vmul.f32 0.2, %v537_v27 }
 0x72b   :  { %v540_v29 = vsel %vm538_vm6, %v537_v27, %v539_v28  ;;  %vm1107_vm6 = vmand %vm678_vm1, %vm679_vm3 }
 0x72c   :  { %817 = vmatmul.mubr.msk.f32.vlgmr.msra.gmra.mxu1 %vm1182_vm2, %v540_v29  ;;  %vm1127_vm1 = vmand %vm689_vm10, %vm690_vm11 }
 0x7ec   :  { %v615_v33 = vpop.f32.mrf.mxu1 }
 0x7ed   :  { %v616_v35 = vadd.f32 %v615_v33, %v545_v32 }
 0x7ee   :  { %v818_v36 = vpop.f32.mrf.mxu1 }
 0x7ef   :  { %v1084_v38 = vadd.f32 %v619_v34, %v616_v35 }
 0x7f1   :  { %v637_v41 = vsel %vm1080_vm13, %v1084_v38, -1e+30  ;;  %v626_v42 = vsel %vm624_vm14, %v1084_v38, -1e+30  ;;  %v659_v45 = vsel %vm1086_vm15, %v1084_v38, -1e+30 }
 0x7f2   :  { %v638_v43 = vsel %vm1182_vm2, %v637_v41, -inf  ;;  %v627_v44 = vsel %vm1182_vm2, %v626_v42, -inf  ;;  %v648_v46 = vsel %vm1090_vm0, %v1084_v38, -1e+30  ;;  %v660_v49 = vsel %vm1182_vm2, %v659_v45, -inf }
 0x7f3   :  { %639 = vmax.xlane.f32.xlu1 %v638_v43  ;;  %628 = vmax.xlane.f32.xlu0 %v627_v44  ;;  %v649_v50 = vsel %vm1182_vm2, %v648_v46, -inf  ;;  %v681_v51 = vsel %vm1107_vm6, %v1084_v38, -1e+30  ;;  %v670_v52 = vsel %vm1111_vm7, %v1084_v38, -1e+30 }
 0x7f4   :  { %v682_v55 = vsel %vm1182_vm2, %v681_v51, -inf  ;;  %v671_v56 = vsel %vm1182_vm2, %v670_v52, -inf  ;;  %v703_v57 = vsel %vm1123_vm12, %v1084_v38, -1e+30  ;;  %v692_v58 = vsel %vm1127_vm1, %v1084_v38, -1e+30 }
 0x7f5   :  { %v704_v59 = vsel %vm1182_vm2, %v703_v57, -inf  ;;  %v693_v60 = vsel %vm1182_vm2, %v692_v58, -inf }
 0x7f7   :  { %661 = vmax.xlane.f32.xlu1 %v660_v49  ;;  %650 = vmax.xlane.f32.xlu0 %v649_v50 }
 0x7fb   :  { %683 = vmax.xlane.f32.xlu1 %v682_v55  ;;  %672 = vmax.xlane.f32.xlu0 %v671_v56 }
 0x7ff   :  { %705 = vmax.xlane.f32.xlu1 %v704_v59  ;;  %694 = vmax.xlane.f32.xlu0 %v693_v60 }
 0x87c   :  { %v640_v61 = vpop.xlane.xlu1 %639  ;;  %v629_v62 = vpop.xlane.xlu0 %628 }
 0x87d   :  { %vm641_vm3 = vcmp.eq.f32.partialorder %v1084_v38, %v640_v61  ;;  %vm630_vm4 = vcmp.eq.f32.partialorder %v1084_v38, %v629_v62 }
 0x87e   :  { %vm642_vm5 = vmand %vm1080_vm13, %vm641_vm3 }
 0x87f   :  { %vm631_vm8 = vmand %vm624_vm14, %vm630_vm4  ;;  %v643_v63 = vsel %vm642_vm5, 1.0, %v856_v2 }
 0x880   :  { %v632_v0 = vsel %vm631_vm8, 1.0, %v856_v2  ;;  %v662_v1 = vpop.xlane.xlu1 %661  ;;  %v651_v3 = vpop.xlane.xlu0 %650 }
 0x881   :  { %vm663_vm9 = vcmp.eq.f32.partialorder %v1084_v38, %v662_v1  ;;  %vm652_vm10 = vcmp.eq.f32.partialorder %v1084_v38, %v651_v3  ;;  %v644_v4 = vadd.f32 %v643_v63, %v632_v0 }
 0x882   :  { %vm664_vm11 = vmand %vm1086_vm15, %vm663_vm9 }
 0x883   :  { %vm653_vm2 = vmand %vm1090_vm0, %vm652_vm10  ;;  %v665_v10 = vsel %vm664_vm11, 1.0, %v856_v2 }
 0x884   :  { %v654_v6 = vsel %vm653_vm2, 1.0, %v856_v2  ;;  %v684_v7 = vpop.xlane.xlu1 %683  ;;  %v673_v8 = vpop.xlane.xlu0 %672 }
 0x885   :  { %v655_v9 = vadd.f32 %v654_v6, %v644_v4  ;;  %vm685_vm13 = vcmp.eq.f32.partialorder %v1084_v38, %v684_v7  ;;  %vm674_vm14 = vcmp.eq.f32.partialorder %v1084_v38, %v673_v8 }
 0x886   :  { %vm686_vm3 = vmand %vm1107_vm6, %vm685_vm13 }
 0x887   :  { %v666_v11 = vadd.f32 %v665_v10, %v655_v9  ;;  %vm675_vm15 = vmand %vm1111_vm7, %vm674_vm14  ;;  %v687_v15 = vsel %vm686_vm3, 1.0, %v856_v2  ;;  %vm1197_vm7 = vcmask 261120  }
 0x888   :  { %v676_v5 = vsel %vm675_vm15, 1.0, %v856_v2  ;;  %v706_v12 = vpop.xlane.xlu1 %705  ;;  %v695_v13 = vpop.xlane.xlu0 %694 }
 0x889   :  { %v677_v14 = vadd.f32 %v676_v5, %v666_v11  ;;  %vm707_vm2 = vcmp.eq.f32.partialorder %v1084_v38, %v706_v12  ;;  %vm696_vm0 = vcmp.eq.f32.partialorder %v1084_v38, %v695_v13 }
 0x88a   :  { %vm708_vm4 = vmand %vm1123_vm12, %vm707_vm2 }
 0x88b   :  { %v688_v16 = vadd.f32 %v687_v15, %v677_v14  ;;  %vm697_vm6 = vmand %vm1127_vm1, %vm696_vm0  ;;  %v709_v19 = vsel %vm708_vm4, 1.0, %v856_v2 }
 0x88c   :  { %v698_v17 = vsel %vm697_vm6, 1.0, %v856_v2 }
 0x88d   :  { %v699_v18 = vadd.f32 %v698_v17, %v688_v16 }
 0x88f   :  { %v710_v20 = vadd.f32 %v709_v19, %v699_v18 }
 0x891   :  { %711 = vst.msk [vmem:[#allocation2] sm:$0xff] %vm1197_vm7, %v710_v20 }
 0x892   :  { %845 = shalt.err (!%p842_p4)
}
 0x893   :  { %721 = dma.vmem_to_hbm [thread:$0]  %s719_s3, 128, %s1181_s5, [#allocation3]  }
 0x894   :  { %854 = dma.done.wait [#allocation3], 128  }
 0x895   :  { %855 = vsyncadd [#allocation3], 4294967168 }
 0x896   :  { %725 = vsyncpa [#allocation3], 1 }

</bundles_post_ra>
